<compile_context>
chip_gen: v7x
topology: tpu7x:2x2x1
jax: 0.10.0
libtpu: 0.0.40
codegen_flags: <defaults>
</compile_context>

<pallas_src>
import math

import numpy as np
import jax
import jax.numpy as jnp
from jax import lax
from jax.experimental import pallas as pl
from jax.experimental.pallas import tpu as pltpu


def _round_up(x, m):
    return ((x + m - 1) // m) * m


def _largest_aligned_divisor(dim, target, align):
    """Largest multiple of `align` that divides `dim` and is <= max(target, align).

    Returns None if `dim` is not a multiple of `align`.
    """
    if dim % align != 0:
        return None
    t = min((max(target, align) // align) * align, dim)
    while t >= align:
        if dim % t == 0:
            return t
        t -= align
    return None


def _vmem_caps():
    """Return (tile-footprint budget, vmem_limit_bytes) for the current chip.

    v7x: 64 MiB physical per TensorCore  -> ~46 MiB tile budget.
    v5e/v6e: 128 MiB physical            -> ~92-100 MiB tile budget.
    """
    try:
        cap = int(pltpu.get_tpu_info().vmem_capacity_bytes)
    except Exception:
        cap = 64 << 20  # conservative (v7x-safe) fallback
    budget = min(int(cap * 0.72), 100 << 20)
    limit = min(int(cap * 0.90), 120 << 20)
    return budget, limit


def prepare_generator_params(weight, bias, *, param_dtype=None):
    """One-time (load-time) parameter prep.  Do NOT call per forward.

    Casting the (vocab, d_model) LM-head weight is a full HBM read+write of the
    largest tensor; doing it here (once) instead of inside the forward makes
    bf16 streaming effectively free.  The kernel contracts against the native
    PyTorch (vocab, d_model) layout, so no transpose is needed.
    """
    if param_dtype is not None:
        weight = weight.astype(param_dtype)
    return weight, bias


def _generator_kernel(x_ref, w_ref, b_ref, o_ref, acc_ref):
    """Compute one (tile_m, tile_n) output tile, accumulating over the K axis.

    x_ref:   (TM, TK)  activation tile
    w_ref:   (TN, TK)  weight tile in native PyTorch (vocab, d_model) layout
    b_ref:   (1,  TN)  bias tile
    o_ref:   (TM, TN)  output tile
    acc_ref: (TM, TN)  fp32 VMEM accumulator (persists across K grid steps)
    """
    k = pl.program_id(2)

    @pl.when(k == 0)
    def _():
        # Seed the accumulator with the broadcast bias -> no epilogue add.
        acc_ref[...] = jnp.broadcast_to(
            b_ref[...].astype(jnp.float32), acc_ref.shape)

    # x @ W.T without materializing a transposed weight: contract the last dim
    # of x against the last dim of W directly on the MXU.
    # TODO(synk): confirm via pl.lower_as_mlir that this emits no per-step
    # vxpose / relayout; if it does, pre-transpose W to (d_model, vocab) once at
    # parameter-load time and switch to a (((1,),(0,))) contraction.
    acc_ref[...] += lax.dot_general(
        x_ref[...], w_ref[...],
        dimension_numbers=(((1,), (1,)), ((), ())),
        preferred_element_type=jnp.float32)

    @pl.when(k == pl.num_programs(2) - 1)
    def _():
        o_ref[...] = acc_ref[...].astype(o_ref.dtype)


def generator_forward(x, weight, bias, *, out_dtype=None,
                      tile_m_target=512, tile_n_target=2048, tile_k_target=1024):
    """Pallas equivalent of Generator.forward: y = x @ W.T + b over the last dim.

    x:      (..., d_model)
    weight: (vocab, d_model) -- PyTorch nn.Linear layout, used as-is.
    bias:   (vocab,)

    Compute dtype follows the weight dtype (pre-cast it once with
    prepare_generator_params for bf16 streaming); x is cast to match if needed.
    """
    *lead, d_model = x.shape
    vocab, d_model_w = weight.shape
    assert d_model == d_model_w, "weight / activation d_model mismatch"
    assert bias.shape == (vocab,), "bias must be (vocab,)"

    out_dtype = out_dtype or x.dtype
    if x.dtype != weight.dtype:
        # Activations are far smaller than the LM-head weight; casting them per
        # call is cheap and keeps the weight stream in its stored dtype.
        x = x.astype(weight.dtype)

    m = math.prod(lead) if lead else 1
    x2d = x.reshape(m, d_model)
    b2d = bias.reshape(1, vocab)

    in_item = np.dtype(weight.dtype).itemsize
    out_item = np.dtype(out_dtype).itemsize
    bias_item = np.dtype(bias.dtype).itemsize
    sub_mult = {4: 8, 2: 16, 1: 32}.get(in_item, 8)

    # ---- K (contraction) tiling: must be exactly covered (no partial blocks,
    # otherwise garbage columns would contaminate real outputs).
    pad_k = 0
    tile_k = _largest_aligned_divisor(d_model, tile_k_target, 128)
    if tile_k is None:
        if d_model <= max(tile_k_target, 2048):
            tile_k = d_model  # full-dim block: always legal, single K step
        else:
            # Rare: large, non-128-aligned d_model.  Zero-pad the contraction
            # axis (zeros contribute nothing).  TODO(synk): do this at load time.
            pad_k = _round_up(d_model, 128) - d_model
            tile_k = _largest_aligned_divisor(d_model + pad_k, tile_k_target, 128)
    if pad_k:
        x2d = jnp.pad(x2d, ((0, 0), (0, pad_k)))
        weight = jnp.pad(weight, ((0, 0), (0, pad_k)))
    d_model_p = d_model + pad_k

    # ---- M / N tiling: ragged edges handled by Pallas partial blocks via
    # pl.cdiv grids; block shapes stay (sub_mult, 128)-aligned or full-dim.
    tile_m = m if m <= tile_m_target else tile_m_target
    tile_n = vocab if vocab <= tile_n_target else tile_n_target

    # ---- Generation-aware VMEM budgeting: shrink tiles until the
    # double-buffered footprint fits the chip.
    budget, limit = _vmem_caps()

    def footprint(tm, tn, tk):
        return (2 * (tm * tk + tn * tk) * in_item + 2 * tn * bias_item
                + 2 * tm * tn * out_item + tm * tn * 4)

    while footprint(tile_m, tile_n, tile_k) > budget:
        if tile_n % 256 == 0 and tile_n > 128:
            tile_n //= 2
        elif tile_k % 256 == 0 and tile_k > 128:
            tile_k //= 2
        elif tile_m % (2 * sub_mult) == 0 and tile_m > sub_mult:
            tile_m //= 2
        else:
            break

    grid = (pl.cdiv(m, tile_m), pl.cdiv(vocab, tile_n), d_model_p // tile_k)
    grid_m, grid_n, _ = grid

    vmem_limit = int(min(max(2 * footprint(tile_m, tile_n, tile_k), 8 << 20),
                         limit))

    cost = pl.CostEstimate(
        flops=2 * m * d_model * vocab,
        transcendentals=0,
        bytes_accessed=(grid_n * m * d_model_p * in_item      # x re-streamed per N block
                        + grid_m * vocab * d_model_p * in_item  # W re-streamed per M block
                        + grid_m * vocab * bias_item
                        + m * vocab * out_item))

    out2d = pl.pallas_call(
        _generator_kernel,
        out_shape=jax.ShapeDtypeStruct((m, vocab), out_dtype),
        grid_spec=pltpu.PrefetchScalarGridSpec(
            num_scalar_prefetch=0,
            grid=grid,
            in_specs=[
                pl.BlockSpec((tile_m, tile_k), lambda i, j, k: (i, k)),  # x tile
                pl.BlockSpec((tile_n, tile_k), lambda i, j, k: (j, k)),  # W tile (native layout)
                pl.BlockSpec((1, tile_n), lambda i, j, k: (0, j)),       # bias tile
            ],
            out_specs=pl.BlockSpec((tile_m, tile_n), lambda i, j, k: (i, j)),
            scratch_shapes=[pltpu.VMEM((tile_m, tile_n), jnp.float32)],
        ),
        compiler_params=pltpu.CompilerParams(
            dimension_semantics=("parallel", "parallel", "arbitrary"),
            vmem_limit_bytes=vmem_limit),
        cost_estimate=cost,
    )(x2d, weight, b2d)

    return out2d.reshape(*lead, vocab)


if __name__ == "__main__":
    key = jax.random.PRNGKey(0)
    kx, kw, kb = jax.random.split(key, 3)

    # Small shapes consistent with the module: (batch, seq, d_model) -> vocab.
    batch, seq, d_model, vocab = 2, 8, 32, 64
    x = jax.random.normal(kx, (batch, seq, d_model), dtype=jnp.float32)
    weight = jax.random.normal(kw, (vocab, d_model), dtype=jnp.float32) * 0.05
    bias = jax.random.normal(kb, (vocab,), dtype=jnp.float32) * 0.01

    out = jax.block_until_ready(generator_forward(x, weight, bias))
    ref = x @ weight.T + bias
    assert out.shape == (batch, seq, vocab)
    assert jnp.allclose(out, ref, atol=1e-5, rtol=1e-5)

    # Ragged M (300 rows) with 128-aligned d_model / vocab: single-block path.
    b2, s2, dm2, vo2 = 2, 150, 256, 384
    x2 = jax.random.normal(kx, (b2, s2, dm2), dtype=jnp.float32)
    w2 = jax.random.normal(kw, (vo2, dm2), dtype=jnp.float32) * 0.05
    bs2 = jax.random.normal(kb, (vo2,), dtype=jnp.float32) * 0.01
    ref2 = x2 @ w2.T + bs2

    out2 = jax.block_until_ready(generator_forward(x2, w2, bs2))
    assert out2.shape == (b2, s2, vo2)
    assert jnp.allclose(out2, ref2, atol=1e-4, rtol=1e-4)

    # Same problem with tiny explicit tiles: exercises partial M edge blocks,
    # multiple N blocks, and multi-step K accumulation.
    out2b = jax.block_until_ready(
        generator_forward(x2, w2, bs2,
                          tile_m_target=128, tile_n_target=128, tile_k_target=128))
    assert jnp.allclose(out2b, ref2, atol=1e-4, rtol=1e-4)

    # bf16-streamed weight, cast ONCE at "load time" (fp32 accumulation in-kernel).
    w2_bf16, bs2_prep = prepare_generator_params(w2, bs2, param_dtype=jnp.bfloat16)
    out3 = jax.block_until_ready(
        generator_forward(x2, w2_bf16, bs2_prep, out_dtype=jnp.float32))
    assert jnp.allclose(out3, ref2, atol=5e-2, rtol=5e-2)

    # Ragged vocab (not 128-divisible) and ragged d_model: full-dim tiles when
    # small, partial N edge blocks when tiled.
    b4, s4, dm4, vo4 = 2, 13, 96, 1000
    x4 = jax.random.normal(kx, (b4, s4, dm4), dtype=jnp.float32)
    w4 = jax.random.normal(kw, (vo4, dm4), dtype=jnp.float32) * 0.05
    bs4 = jax.random.normal(kb, (vo4,), dtype=jnp.float32) * 0.01
    ref4 = x4 @ w4.T + bs4

    out4 = jax.block_until_ready(generator_forward(x4, w4, bs4))
    assert jnp.allclose(out4, ref4, atol=1e-4, rtol=1e-4)

    out4b = jax.block_until_ready(
        generator_forward(x4, w4, bs4, tile_n_target=128))  # partial N edge block
    assert jnp.allclose(out4b, ref4, atol=1e-4, rtol=1e-4)

    print("KERNEL_OK")
</pallas_src>

<mosaic_0001>
module attributes {stable_mosaic.version = 11 : i64} {
  func.func @_generator_kernel(%arg0: i32, %arg1: i32, %arg2: i32, %arg3: memref<16x32xf32, #tpu.memory_space<vmem>>, %arg4: memref<64x32xf32, #tpu.memory_space<vmem>>, %arg5: memref<1x64xf32, #tpu.memory_space<vmem>>, %arg6: memref<16x64xf32, #tpu.memory_space<vmem>>, %arg7: memref<16x64xf32, #tpu.memory_space<vmem>>) attributes {dimension_semantics = [#tpu.dimension_semantics<parallel>, #tpu.dimension_semantics<parallel>, #tpu.dimension_semantics<arbitrary>], iteration_bounds = array<i64: 1, 1, 1>, scalar_prefetch = 0 : i64, scratch_operands = 1 : i64, tpu.core_type = #tpu.core_type<tc>, window_params = [{transform_indices = @transform_0, window_bounds = array<i64: 16, 32>}, {transform_indices = @transform_1, window_bounds = array<i64: 64, 32>}, {transform_indices = @transform_2, window_bounds = array<i64: 1, 64>}, {transform_indices = @transform_3, window_bounds = array<i64: 16, 64>}]} {
    %c0_i32 = arith.constant 0 : i32
    %0 = arith.cmpi eq, %arg2, %c0_i32 : i32
    %1 = arith.extui %0 : i1 to i32
    %c0_i32_0 = arith.constant 0 : i32
    %2 = arith.cmpi ne, %1, %c0_i32_0 : i32
    scf.if %2 {
      %c0_10 = arith.constant 0 : index
      %c0_11 = arith.constant 0 : index
      %12 = vector.load %arg5[%c0_10, %c0_11] : memref<1x64xf32, #tpu.memory_space<vmem>>, vector<1x64xf32>
      %13 = vector.shape_cast %12 : vector<1x64xf32> to vector<1x64xf32>
      %14 = vector.broadcast %13 : vector<1x64xf32> to vector<16x64xf32>
      %c0_12 = arith.constant 0 : index
      %c0_13 = arith.constant 0 : index
      %15 = vector.load %arg7[%c0_12, %c0_13] : memref<16x64xf32, #tpu.memory_space<vmem>>, vector<16x64xf32>
      tpu.vector_store %arg7[%c0_12, %c0_13], %14 {strides = array<i32>} : memref<16x64xf32, #tpu.memory_space<vmem>>, vector<16x64xf32>,
    } else {
    }
    %c0 = arith.constant 0 : index
    %c0_1 = arith.constant 0 : index
    %3 = vector.load %arg7[%c0, %c0_1] : memref<16x64xf32, #tpu.memory_space<vmem>>, vector<16x64xf32>
    %c0_2 = arith.constant 0 : index
    %c0_3 = arith.constant 0 : index
    %4 = vector.load %arg3[%c0_2, %c0_3] : memref<16x32xf32, #tpu.memory_space<vmem>>, vector<16x32xf32>
    %c0_4 = arith.constant 0 : index
    %c0_5 = arith.constant 0 : index
    %5 = vector.load %arg4[%c0_4, %c0_5] : memref<64x32xf32, #tpu.memory_space<vmem>>, vector<64x32xf32>
    %cst = arith.constant dense<0.000000e+00> : vector<16x64xf32>
    %6 = tpu.matmul %4, %5, %cst {dimension_numbers = #tpu.dot_dimension_numbers<[1], [1], [0], [0], [0, 0, 1, 0], [], []>} : vector<16x32xf32>, vector<64x32xf32>, vector<16x64xf32> -> vector<16x64xf32>
    %7 = arith.addf %3, %6 : vector<16x64xf32>
    %c0_6 = arith.constant 0 : index
    %c0_7 = arith.constant 0 : index
    %8 = vector.load %arg7[%c0_6, %c0_7] : memref<16x64xf32, #tpu.memory_space<vmem>>, vector<16x64xf32>
    tpu.vector_store %arg7[%c0_6, %c0_7], %7 {strides = array<i32>} : memref<16x64xf32, #tpu.memory_space<vmem>>, vector<16x64xf32>,
    %c0_i32_8 = arith.constant 0 : i32
    %9 = arith.cmpi eq, %arg2, %c0_i32_8 : i32
    %10 = arith.extui %9 : i1 to i32
    %c0_i32_9 = arith.constant 0 : i32
    %11 = arith.cmpi ne, %10, %c0_i32_9 : i32
    scf.if %11 {
      %c0_10 = arith.constant 0 : index
      %c0_11 = arith.constant 0 : index
      %12 = vector.load %arg7[%c0_10, %c0_11] : memref<16x64xf32, #tpu.memory_space<vmem>>, vector<16x64xf32>
      %c0_12 = arith.constant 0 : index
      %c0_13 = arith.constant 0 : index
      %13 = vector.load %arg6[%c0_12, %c0_13] : memref<16x64xf32, #tpu.memory_space<vmem>>, vector<16x64xf32>
      tpu.vector_store %arg6[%c0_12, %c0_13], %12 {strides = array<i32>} : memref<16x64xf32, #tpu.memory_space<vmem>>, vector<16x64xf32>,
    } else {
    }
    return
  }
  func.func @transform_0(%arg0: i32, %arg1: i32, %arg2: i32) -> (i32, i32) {
    %c0_i32 = arith.constant 0 : i32
    return %arg0, %arg2 : i32, i32
  }
  func.func @transform_1(%arg0: i32, %arg1: i32, %arg2: i32) -> (i32, i32) {
    %c0_i32 = arith.constant 0 : i32
    return %arg1, %arg2 : i32, i32
  }
  func.func @transform_2(%arg0: i32, %arg1: i32, %arg2: i32) -> (i32, i32) {
    %c0_i32 = arith.constant 0 : i32
    %c0_i32_0 = arith.constant 0 : i32
    return %c0_i32, %arg1 : i32, i32
  }
  func.func @transform_3(%arg0: i32, %arg1: i32, %arg2: i32) -> (i32, i32) {
    %c0_i32 = arith.constant 0 : i32
    return %arg0, %arg1 : i32, i32
  }
}

</mosaic_0001>

<bundles_post_ra>
// kernel: tpu_custom_call.1
= control target key start
LH: loop header
LB: loop body
LE: loop exit
PB: predicated region body
PF: predicated region fallthrough
CT: control target
= control target key end

     0   :  { %vm41_vm0 = vcmask 261120   ;;  %vm26_vm2 = vcmask 523264   ;;  %s364_s0 = inlined_call_operand.vmem [shape: f32[16,32], index: 0, kind: input, shape index: {}]   ;;  %s365_s1 = inlined_call_operand.vmem [shape: f32[64,32], index: 1, kind: input, shape index: {}]   ;;  %s366_s2 = inlined_call_operand.vmem [shape: f32[1,64], index: 2, kind: input, shape index: {}]   ;;  %s367_s3 = inlined_call_operand.hbm [shape: f32[16,64], index: 3, kind: output, shape index: {}]  }
   0x1   :  { %v33_v0 = vld [vmem:[%s365_s1] sm:$0xff]  ;;  %v34_v1 = vld [vmem:[%s365_s1 + $0x8] sm:$0xff]  ;;  %v35_v2 = vld [vmem:[%s365_s1 + $0x10] sm:$0xff] }
   0x2   :  { %v215_v3 = vpack.c.bf16 %v34_v1, %v33_v0  ;;  %vm300_vm1 = vmpackc.low %vm41_vm0, %vm41_vm0  ;;  %v36_v5 = vld [vmem:[%s365_s1 + $0x18] sm:$0xff]  ;;  %v31_v7 = vld [vmem:[%s364_s0] sm:$0xff] }
   0x3   :  { %v221_v6 = vpack.c.bf16 %v36_v5, %v35_v2  ;;  %v175_v8 = vld [vmem:[%s366_s2] ss:$0 sm:$0xff]  ;;  %212 = vmatprep.mubr.msk.f32.mxu0 %vm41_vm0, %v31_v7 }
   0x4   :  { %217 = vmatprep.subr.msk.bf16.mxu0 %vm300_vm1, %v215_v3  ;;  %28 = vst.msk [vmem:[#allocation2 + $0x8] sm:$0xff] %vm26_vm2, %v175_v8  ;;  %27 = vst.msk [vmem:[#allocation2] sm:$0xff] %vm26_vm2, %v175_v8 }
   0x5   :  { %220 = vmatpush3.bf16.xpose.msk.msra.mxu0 %vm300_vm1, %v215_v3 }
   0x6   :  { %8 = vsyncpa [#allocation4], 0  ;;  %223 = vmatprep.subr.msk.bf16.mxu0 %vm300_vm1, %v221_v6  ;;  %v37_v9 = vld [vmem:[%s365_s1 + $0x20] sm:$0xff]  ;;  %v38_v10 = vld [vmem:[%s365_s1 + $0x28] sm:$0xff] }
   0x7   :  { %v227_v11 = vpack.c.bf16 %v38_v10, %v37_v9  ;;  %v39_v12 = vld [vmem:[%s365_s1 + $0x30] sm:$0xff]  ;;  %v40_v13 = vld [vmem:[%s365_s1 + $0x38] sm:$0xff]  ;;  %v32_v15 = vld [vmem:[%s364_s0 + $0x8] sm:$0xff]  ;;  %s266_s1 = smov [#allocation3]  }
   0x8   :  { %v233_v14 = vpack.c.bf16 %v40_v13, %v39_v12  ;;  %s164_s6 = sshll.u32 %s266_s1, 4  ;;  %s165_s6 = int_to_ptr.vmem [resolvable:$true] %s164_s6 }
   0x9   :  { %s242_s0 = scalar_lea.vmem %s165_s6, 256  ;;  %p247_p1 = scmp.lt.s32.totalorder %s165_s6, %s165_s6 }
   0xa   :  { %p243_p0 = scmp.ne.s32.totalorder %s165_s6, %s242_s0  ;;  %p248_p2 = scmp.lt.s32.totalorder %s242_s0, %s242_s0 }
   0xb   :  { %v30_v16 = vld [vmem:[#allocation2 + $0x8] sm:$0xff]  ;;  %v29_v17 = vld [vmem:[#allocation2] sm:$0xff] }
   0xc   :  { %p249_p3 = por %p248_p2, %p247_p1 }
   0xd   :  { %226 = vmatpush3.bf16.xpose.msk.msra.mxu0 %vm300_vm1, %v221_v6 }
   0xe   :  { %229 = vmatprep.subr.msk.bf16.mxu0 %vm300_vm1, %v227_v11  ;;  %p250_p4 = pnand %p249_p3, %p243_p0 }
  0x15   :  { %232 = vmatpush3.bf16.xpose.msk.msra.mxu0 %vm300_vm1, %v227_v11 }
  0x16   :  { %235 = vmatprep.subr.msk.bf16.mxu0 %vm300_vm1, %v233_v14 }
  0x1d   :  { %238 = vmatpush3.bf16.xpose.msk.msra.mxu0 %vm300_vm1, %v233_v14 }
  0x24   :  { %213 = vmatmul.mubr.msk.f32.vlgmr.msra.gmra.mrb[0].mxu0 %vm41_vm0, %v32_v15 }
  0xf7   :  { %v214_v18 = vpop.f32.mrb[0].mxu0 }
  0xf8   :  { %v148_v19 = vadd.f32 %v214_v18, %v30_v16  ;;  %v138_v20 = vpop.f32.mrb[1].mxu0 }
  0xf9   :  { %v147_v21 = vadd.f32 %v138_v20, %v29_v17 }
  0xfa   :  { %151 = vst.msk [vmem:[#allocation2 + $0x8] sm:$0xff] %vm26_vm2, %v148_v19 }
  0xfb   :  { %150 = vst.msk [vmem:[#allocation2] sm:$0xff] %vm26_vm2, %v147_v21 }
 0x101   :  { %v156_v22 = vld [vmem:[#allocation2 + $0x8] sm:$0xff] }
 0x102   :  { %v155_v23 = vld [vmem:[#allocation2] sm:$0xff]  ;;  %158 = vst.msk [vmem:[#allocation3 + $0x8] sm:$0xff] %vm26_vm2, %v156_v22 }
 0x103   :  { %157 = vst.msk [vmem:[#allocation3] sm:$0xff] %vm26_vm2, %v155_v23 }
 0x104   :  { %253 = shalt.err (!%p250_p4)
}
 0x105   :  { %s254_s9 = scalar_lea.hbm %s367_s3, 256 }
 0x106   :  { %p255_p5 = scmp.ne.s32.totalorder %s367_s3, %s254_s9  ;;  %p258_p6 = scmp.lt.u32.totalorder %s254_s9, %s367_s3 }
 0x108   :  { %p260_p7 = pnand %p258_p6, %p255_p5 }
 0x10a   :  { %263 = shalt.err (!%p260_p7)
}
 0x10b   :  { %s267_s14 = smov 128   ;;  %s268_s15 = smov 8  }
 0x10c   :  { %170 = dma.vmem_to_hbm [thread:$0]  %s165_s6, 256, %s367_s3, [#allocation4], %s267_s14, %s267_s14, %s268_s15  }
 0x10d   :  { %264 = dma.done.wait [#allocation4], 256  }
 0x10e   :  { %265 = vsyncadd [#allocation4], 4294967040 }
 0x10f   :  { %174 = vsyncpa [#allocation4], 1 }

</bundles_post_ra>
